<compile_context>
chip_gen: v6e
topology: v6e:2x2x1
jax: 0.10.0
libtpu: 0.0.40
codegen_flags: <defaults>
</compile_context>

<pallas_src>
import functools
import numpy as np
import jax
import jax.numpy as jnp
from jax import lax
from jax.experimental import pallas as pl
from jax.experimental.pallas import tpu as pltpu


def _round_up(x, m):
    return ((x + m - 1) // m) * m


def _pick_tile_out(out_p, in_p, target):
    """Pick an Out-tile size that (a) divides Out_p exactly, (b) keeps the two
    double-buffered f32 weight streams under ~12 MiB, (c) gives >= 2 grid steps
    when possible so the parallel axis can split across v7x's 2 TensorCores."""
    budget = 12 * 1024 * 1024                      # 2 arrays * 2 bufs * t * In * 4B
    max_by_vmem = max(128, (budget // (16 * in_p)) // 128 * 128)
    target = max(128, min(out_p, _round_up(target, 128), max_by_vmem))
    m = out_p // 128
    d = target // 128
    while m % d != 0:
        d -= 1
    if d == m and m >= 2:                          # force >= 2 tiles for megacore
        d = m // 2
        while m % d != 0:
            d -= 1
    return 128 * d


def noisy_linear_kernel(x_ref, eps_in_ref, wmu_ref, wsig_ref, aux_ref, o_ref):
    """One Out-tile of: y = x @ wmu.T + ((x*eps_in) @ wsig.T) * eps_out + b."""
    t_out = o_ref.shape[1]
    off = pl.multiple_of(pl.program_id(0) * t_out, 128)

    x = x_ref[...]                                 # (B_p, In_p) resident
    xs = x * eps_in_ref[...]                       # (B_p, In_p)

    # Both matmuls in NT orientation (contract dim 1 of both operands) — no
    # transpose of the weight tiles, f32 accumulation on the MXU.
    y_mu = lax.dot_general(x, wmu_ref[...],
                           dimension_numbers=(((1,), (1,)), ((), ())),
                           preferred_element_type=jnp.float32)   # (B_p, t_out)
    y_sig = lax.dot_general(xs, wsig_ref[...],
                            dimension_numbers=(((1,), (1,)), ((), ())),
                            preferred_element_type=jnp.float32)  # (B_p, t_out)

    # Resident aux array: row 0 = bias_mu + bias_sigma*eps_out, row 1 = eps_out.
    b_eff = aux_ref[0:1, pl.ds(off, t_out)]        # (1, t_out)
    e_out = aux_ref[1:2, pl.ds(off, t_out)]        # (1, t_out)

    o_ref[...] = (y_mu + y_sig * e_out + b_eff).astype(o_ref.dtype)


def prepare_noisy_params(weight_mu, weight_sigma, bias_mu, bias_sigma,
                         eps_in, eps_out):
    """One-time (per reset_noise / parameter update) padding & packing.

    Keeps the per-call forward free of weight-matrix pads; weight_epsilon is
    never materialized (the kernel uses the factorized form)."""
    out_f, in_f = weight_mu.shape
    in_p = _round_up(in_f, 128)
    out_p = _round_up(out_f, 128)

    pad_w = lambda a: jnp.pad(a, ((0, out_p - out_f), (0, in_p - in_f)))
    wmu_p = pad_w(weight_mu.astype(jnp.float32))            # (Out_p, In_p)
    wsig_p = pad_w(weight_sigma.astype(jnp.float32))         # (Out_p, In_p)
    eps_in_row = jnp.pad(eps_in.astype(jnp.float32),
                         (0, in_p - in_f)).reshape(1, in_p)  # (1, In_p)

    b_eff = bias_mu + bias_sigma * eps_out                   # bias_epsilon == eps_out
    aux = jnp.stack([jnp.pad(b_eff.astype(jnp.float32), (0, out_p - out_f)),
                     jnp.pad(eps_out.astype(jnp.float32), (0, out_p - out_f))],
                    axis=0)                                  # (2, Out_p)
    return wmu_p, wsig_p, eps_in_row, aux


@functools.partial(jax.jit, static_argnames=("out_features", "tile_out"))
def noisy_linear(x, weight_mu_p, weight_sigma_p, eps_in_row, aux,
                 out_features, tile_out=512):
    """Noisy linear forward.  x: (B, in); padded params from prepare_noisy_params."""
    B, in_f = x.shape
    out_p, in_p = weight_mu_p.shape
    assert eps_in_row.shape == (1, in_p)
    assert aux.shape == (2, out_p)
    assert in_f <= in_p and out_features <= out_p

    B_p = _round_up(B, 8)
    x_p = jnp.pad(x.astype(jnp.float32), ((0, B_p - B), (0, in_p - in_f)))

    t_out = _pick_tile_out(out_p, in_p, tile_out)
    n_tiles = out_p // t_out                     # exact by construction

    out_pad = pl.pallas_call(
        noisy_linear_kernel,
        out_shape=jax.ShapeDtypeStruct((B_p, out_p), jnp.float32),
        grid=(n_tiles,),
        in_specs=[
            # Grid-invariant blocks (constant index_map -> fetched once).
            pl.BlockSpec((B_p, in_p), lambda j: (0, 0)),      # x resident
            pl.BlockSpec((1, in_p), lambda j: (0, 0)),        # eps_in resident
            # Weight streams tiled along Out -> double-buffered by pipeline.
            pl.BlockSpec((t_out, in_p), lambda j: (j, 0)),    # weight_mu
            pl.BlockSpec((t_out, in_p), lambda j: (j, 0)),    # weight_sigma
            # Packed bias/eps_out, resident; sliced in-kernel with pl.ds.
            pl.BlockSpec((2, out_p), lambda j: (0, 0)),
        ],
        out_specs=pl.BlockSpec((B_p, t_out), lambda j: (0, j)),
        compiler_params=pltpu.CompilerParams(
            dimension_semantics=("parallel",),
            vmem_limit_bytes=32 * 1024 * 1024),
    )(x_p, eps_in_row, weight_mu_p, weight_sigma_p, aux)

    return out_pad[:B, :out_features].astype(x.dtype)


def scale_noise(key, size):
    """Factorized-noise transform: f(x) = sign(x) * sqrt(|x|)."""
    x = jax.random.normal(key, (size,), dtype=jnp.float32)
    return jnp.sign(x) * jnp.sqrt(jnp.abs(x))


def make_params(key, in_features, out_features, sigma_init=0.017):
    """Deterministic re-implementation of reset_parameters() + reset_noise()."""
    k_wmu, k_bmu, k_ein, k_eout = jax.random.split(key, 4)
    mu_range = 1.0 / np.sqrt(in_features)
    weight_mu = jax.random.uniform(
        k_wmu, (out_features, in_features), minval=-mu_range, maxval=mu_range,
        dtype=jnp.float32)
    weight_sigma = jnp.full((out_features, in_features),
                            sigma_init / np.sqrt(in_features), dtype=jnp.float32)
    bias_mu = jax.random.uniform(
        k_bmu, (out_features,), minval=-mu_range, maxval=mu_range,
        dtype=jnp.float32)
    bias_sigma = jnp.full((out_features,),
                          sigma_init / np.sqrt(out_features), dtype=jnp.float32)
    eps_in = scale_noise(k_ein, in_features)      # (in,)
    eps_out = scale_noise(k_eout, out_features)   # (out,)
    return weight_mu, weight_sigma, bias_mu, bias_sigma, eps_in, eps_out


def _check(key, batch, in_features, out_features):
    k_p, k_x = jax.random.split(key)
    w_mu, w_sig, b_mu, b_sig, eps_in, eps_out = make_params(
        k_p, in_features, out_features)
    x = jax.random.normal(k_x, (batch, in_features), dtype=jnp.float32)

    packed = prepare_noisy_params(w_mu, w_sig, b_mu, b_sig, eps_in, eps_out)
    y = noisy_linear(x, *packed, out_features=out_features)
    y = jax.block_until_ready(y)

    # Reference: exactly the PyTorch training-mode forward in plain JAX.
    w_ref = w_mu + w_sig * jnp.outer(eps_out, eps_in)
    b_ref = b_mu + b_sig * eps_out
    y_ref = x @ w_ref.T + b_ref
    np.testing.assert_allclose(np.asarray(y), np.asarray(y_ref),
                               rtol=1e-5, atol=1e-5)
    assert y.shape == (batch, out_features)


if __name__ == "__main__":
    key = jax.random.PRNGKey(0)
    k1, k2 = jax.random.split(key)

    # Primary small config (consistent with a NoisyDQN hidden layer).
    _check(k1, batch=8, in_features=32, out_features=32)
    # Ragged config: exercises padding + multi-tile Out grid (tail handled).
    _check(k2, batch=5, in_features=48, out_features=200)

    print("KERNEL_OK")
</pallas_src>

<mosaic_0001>
module attributes {stable_mosaic.version = 11 : i64} {
  func.func @noisy_linear_kernel(%arg0: i32, %arg1: memref<8x128xf32, #tpu.memory_space<vmem>>, %arg2: memref<1x128xf32, #tpu.memory_space<vmem>>, %arg3: memref<128x128xf32, #tpu.memory_space<vmem>>, %arg4: memref<128x128xf32, #tpu.memory_space<vmem>>, %arg5: memref<2x128xf32, #tpu.memory_space<vmem>>, %arg6: memref<8x128xf32, #tpu.memory_space<vmem>>) attributes {dimension_semantics = [#tpu.dimension_semantics<parallel>], iteration_bounds = array<i64: 1>, scalar_prefetch = 0 : i64, scratch_operands = 0 : i64, tpu.core_type = #tpu.core_type<tc>, window_params = [{pipeline_mode = #tpu.pipeline_mode<synchronous>, transform_indices = @transform_0, window_bounds = array<i64: 8, 128>}, {pipeline_mode = #tpu.pipeline_mode<synchronous>, transform_indices = @transform_1, window_bounds = array<i64: 1, 128>}, {transform_indices = @transform_2, window_bounds = array<i64: 128, 128>}, {transform_indices = @transform_3, window_bounds = array<i64: 128, 128>}, {pipeline_mode = #tpu.pipeline_mode<synchronous>, transform_indices = @transform_4, window_bounds = array<i64: 2, 128>}, {transform_indices = @transform_5, window_bounds = array<i64: 8, 128>}]} {
    %c128_i32 = arith.constant 128 : i32
    %0 = arith.muli %arg0, %c128_i32 : i32
    %1 = tpu.assume_multiple %0, 128 : i32
    %c0 = arith.constant 0 : index
    %c0_0 = arith.constant 0 : index
    %2 = vector.load %arg1[%c0, %c0_0] : memref<8x128xf32, #tpu.memory_space<vmem>>, vector<8x128xf32>
    %c0_1 = arith.constant 0 : index
    %c0_2 = arith.constant 0 : index
    %3 = vector.load %arg2[%c0_1, %c0_2] : memref<1x128xf32, #tpu.memory_space<vmem>>, vector<1x128xf32>
    %4 = vector.broadcast %3 : vector<1x128xf32> to vector<8x128xf32>
    %5 = arith.mulf %2, %4 : vector<8x128xf32>
    %c0_3 = arith.constant 0 : index
    %c0_4 = arith.constant 0 : index
    %6 = vector.load %arg3[%c0_3, %c0_4] : memref<128x128xf32, #tpu.memory_space<vmem>>, vector<128x128xf32>
    %cst = arith.constant dense<0.000000e+00> : vector<8x128xf32>
    %7 = tpu.matmul %2, %6, %cst {dimension_numbers = #tpu.dot_dimension_numbers<[1], [1], [0], [0], [0, 0, 1, 0], [], []>} : vector<8x128xf32>, vector<128x128xf32>, vector<8x128xf32> -> vector<8x128xf32>
    %c0_5 = arith.constant 0 : index
    %c0_6 = arith.constant 0 : index
    %8 = vector.load %arg4[%c0_5, %c0_6] : memref<128x128xf32, #tpu.memory_space<vmem>>, vector<128x128xf32>
    %cst_7 = arith.constant dense<0.000000e+00> : vector<8x128xf32>
    %9 = tpu.matmul %5, %8, %cst_7 {dimension_numbers = #tpu.dot_dimension_numbers<[1], [1], [0], [0], [0, 0, 1, 0], [], []>} : vector<8x128xf32>, vector<128x128xf32>, vector<8x128xf32> -> vector<8x128xf32>
    %c0_8 = arith.constant 0 : index
    %10 = arith.index_cast %1 : i32 to index
    %11 = vector.load %arg5[%c0_8, %10] : memref<2x128xf32, #tpu.memory_space<vmem>>, vector<1x128xf32>
    %c1 = arith.constant 1 : index
    %12 = arith.index_cast %1 : i32 to index
    %13 = vector.load %arg5[%c1, %12] : memref<2x128xf32, #tpu.memory_space<vmem>>, vector<1x128xf32>
    %14 = vector.broadcast %13 : vector<1x128xf32> to vector<8x128xf32>
    %15 = arith.mulf %9, %14 : vector<8x128xf32>
    %16 = arith.addf %7, %15 : vector<8x128xf32>
    %17 = vector.broadcast %11 : vector<1x128xf32> to vector<8x128xf32>
    %18 = arith.addf %16, %17 : vector<8x128xf32>
    %c0_9 = arith.constant 0 : index
    %c0_10 = arith.constant 0 : index
    %19 = vector.load %arg6[%c0_9, %c0_10] : memref<8x128xf32, #tpu.memory_space<vmem>>, vector<8x128xf32>
    tpu.vector_store %arg6[%c0_9, %c0_10], %18 {strides = array<i32>} : memref<8x128xf32, #tpu.memory_space<vmem>>, vector<8x128xf32>,
    return
  }
  func.func @transform_0(%arg0: i32) -> (i32, i32) {
    %c0_i32 = arith.constant 0 : i32
    %c0_i32_0 = arith.constant 0 : i32
    %c0_i32_1 = arith.constant 0 : i32
    return %c0_i32, %c0_i32_0 : i32, i32
  }
  func.func @transform_1(%arg0: i32) -> (i32, i32) {
    %c0_i32 = arith.constant 0 : i32
    %c0_i32_0 = arith.constant 0 : i32
    %c0_i32_1 = arith.constant 0 : i32
    return %c0_i32, %c0_i32_0 : i32, i32
  }
  func.func @transform_2(%arg0: i32) -> (i32, i32) {
    %c0_i32 = arith.constant 0 : i32
    %c0_i32_0 = arith.constant 0 : i32
    return %arg0, %c0_i32 : i32, i32
  }
  func.func @transform_3(%arg0: i32) -> (i32, i32) {
    %c0_i32 = arith.constant 0 : i32
    %c0_i32_0 = arith.constant 0 : i32
    return %arg0, %c0_i32 : i32, i32
  }
  func.func @transform_4(%arg0: i32) -> (i32, i32) {
    %c0_i32 = arith.constant 0 : i32
    %c0_i32_0 = arith.constant 0 : i32
    %c0_i32_1 = arith.constant 0 : i32
    return %c0_i32, %c0_i32_0 : i32, i32
  }
  func.func @transform_5(%arg0: i32) -> (i32, i32) {
    %c0_i32 = arith.constant 0 : i32
    %c0_i32_0 = arith.constant 0 : i32
    return %c0_i32, %arg0 : i32, i32
  }
}

</mosaic_0001>

<bundles_post_ra>
// kernel: noisy_linear.1
= control target key start
LH: loop header
LB: loop body
LE: loop exit
PB: predicated region body
PF: predicated region fallthrough
CT: control target
= control target key end

     0   :  { %10 = vsyncpa [#allocation3], 0  ;;  %s536_s0 = inlined_call_operand.vmem [shape: f32[8,128], index: 0, kind: input, shape index: {}]   ;;  %s537_s1 = inlined_call_operand.vmem [shape: f32[1,128], index: 1, kind: input, shape index: {}]   ;;  %s538_s2 = inlined_call_operand.hbm [shape: f32[128,128], index: 2, kind: input, shape index: {}]   ;;  %s539_s3 = inlined_call_operand.hbm [shape: f32[128,128], index: 3, kind: input, shape index: {}]   ;;  %s540_s4 = inlined_call_operand.vmem [shape: f32[2,128], index: 4, kind: input, shape index: {}]   ;;  %s541_s5 = inlined_call_operand.hbm [shape: f32[8,128], index: 5, kind: output, shape index: {}]  }
   0x1   :  { %11 = vsyncpa [#allocation6], 0 }
   0x2   :  { %12 = vsyncpa [#allocation4], 0  ;;  %s444_s18 = smov [#allocation2]  }
   0x3   :  { %s22_s19 = sshll.u32 %s444_s18, 4  ;;  %s23_s19 = int_to_ptr.vmem [resolvable:$true] %s22_s19 }
   0x4   :  { %s386_s20 = scalar_lea.vmem %s23_s19, 2048  ;;  %p391_p1 = scmp.lt.s32.totalorder %s23_s19, %s23_s19 }
   0x5   :  { %p387_p0 = scmp.ne.s32.totalorder %s23_s19, %s386_s20  ;;  %p392_p2 = scmp.lt.s32.totalorder %s386_s20, %s386_s20 }
   0x7   :  { %p393_p3 = por %p392_p2, %p391_p1 }
   0x9   :  { %p394_p4 = pnand %p393_p3, %p387_p0 }
   0xb   :  { %397 = shalt.err (!%p394_p4)
}
   0xc   :  { %s445_s21 = smov 128   ;;  %s446_s22 = smov 8  }
   0xd   :  { %28 = dma.hbm_to_vmem [thread:$0]  %s538_s2, 2048, %s23_s19, [#allocation3], %s445_s21, %s445_s21, %s446_s22  }
   0xe   :  { %s447_s25 = smov [#allocation5]  }
   0xf   :  { %s34_s26 = sshll.u32 %s447_s25, 4  ;;  %s35_s26 = int_to_ptr.vmem [resolvable:$true] %s34_s26 }
  0x10   :  { %s406_s27 = scalar_lea.vmem %s35_s26, 2048  ;;  %p411_p6 = scmp.lt.s32.totalorder %s35_s26, %s35_s26 }
  0x11   :  { %p407_p5 = scmp.ne.s32.totalorder %s35_s26, %s406_s27  ;;  %p412_p7 = scmp.lt.s32.totalorder %s406_s27, %s406_s27 }
  0x13   :  { %p413_p8 = por %p412_p7, %p411_p6 }
  0x15   :  { %p414_p9 = pnand %p413_p8, %p407_p5 }
  0x17   :  { %417 = shalt.err (!%p414_p9)
}
  0x18   :  { %40 = dma.hbm_to_vmem [thread:$0]  %s539_s3, 2048, %s35_s26, [#allocation6], %s445_s21, %s445_s21, %s446_s22  }
  0x19   :  { %438 = dma.done.wait [#allocation3], 2048  }
  0x1a   :  { %439 = vsyncadd [#allocation3], 4294965248 }
  0x1b   :  { %440 = dma.done.wait [#allocation6], 2048  }
  0x1c   :  { %441 = vsyncadd [#allocation6], 4294965248  ;;  %v448_v0 = vmov 0.0   ;;  %vm449_vm0 = vmmov 0   ;;  %v90_v1 = vld [vmem:[#allocation5 + $0x78] sm:$0xff]  ;;  %v89_v3 = vld [vmem:[#allocation5 + $0x70] sm:$0xff] }
  0x1d   :  { %301 = vmatprep.subr.mxu0 %v448_v0  ;;  %336 = vmatprep.subr.mxu1 %v448_v0  ;;  %v74_v2 = vld [vmem:[#allocation2 + $0x78] sm:$0xff]  ;;  %v73_v4 = vld [vmem:[#allocation2 + $0x70] sm:$0xff]  ;;  %v88_v5 = vld [vmem:[#allocation5 + $0x68] sm:$0xff]  ;;  %s450_s9 = smov [#allocation7]  }
  0x1e   :  { %333 = vmatprep.mubr.msk.f32.mxu0 %vm449_vm0, %v448_v0  ;;  %368 = vmatprep.mubr.msk.f32.mxu1 %vm449_vm0, %v448_v0  ;;  %v72_v6 = vld [vmem:[#allocation2 + $0x68] sm:$0xff]  ;;  %v87_v7 = vld [vmem:[#allocation5 + $0x60] sm:$0xff]  ;;  %v86_v9 = vld [vmem:[#allocation5 + $0x58] sm:$0xff]  ;;  %s253_s10 = sshll.u32 %s450_s9, 4  ;;  %s254_s10 = int_to_ptr.vmem [resolvable:$true] %s253_s10 }
  0x1f   :  { %302 = vmatpush3.xpose.msra.mxu0 %v90_v1  ;;  %337 = vmatpush3.xpose.msra.mxu1 %v74_v2  ;;  %v71_v8 = vld [vmem:[#allocation2 + $0x60] sm:$0xff]  ;;  %v70_v10 = vld [vmem:[#allocation2 + $0x58] sm:$0xff]  ;;  %v85_v11 = vld [vmem:[#allocation5 + $0x50] sm:$0xff]  ;;  %s418_s11 = scalar_lea.vmem %s254_s10, 128  ;;  %p423_p11 = scmp.lt.s32.totalorder %s254_s10, %s254_s10 }
  0x20   :  { %303 = vmatprep.subr.mxu0 %v448_v0  ;;  %338 = vmatprep.subr.mxu1 %v448_v0  ;;  %v69_v12 = vld [vmem:[#allocation2 + $0x50] sm:$0xff]  ;;  %v84_v13 = vld [vmem:[#allocation5 + $0x48] sm:$0xff]  ;;  %v83_v15 = vld [vmem:[#allocation5 + $0x40] sm:$0xff]  ;;  %p419_p10 = scmp.ne.s32.totalorder %s254_s10, %s418_s11  ;;  %p424_p12 = scmp.lt.s32.totalorder %s418_s11, %s418_s11 }
  0x21   :  { %v68_v14 = vld [vmem:[#allocation2 + $0x48] sm:$0xff]  ;;  %v67_v16 = vld [vmem:[#allocation2 + $0x40] sm:$0xff]  ;;  %v82_v17 = vld [vmem:[#allocation5 + $0x38] sm:$0xff] }
  0x22   :  { %v66_v18 = vld [vmem:[#allocation2 + $0x38] sm:$0xff]  ;;  %v81_v19 = vld [vmem:[#allocation5 + $0x30] sm:$0xff]  ;;  %v80_v21 = vld [vmem:[#allocation5 + $0x28] sm:$0xff]  ;;  %p425_p13 = por %p424_p12, %p423_p11 }
  0x23   :  { %304 = vmatpush3.xpose.msra.mxu0 %v89_v3  ;;  %339 = vmatpush3.xpose.msra.mxu1 %v73_v4  ;;  %v65_v20 = vld [vmem:[#allocation2 + $0x30] sm:$0xff]  ;;  %v64_v22 = vld [vmem:[#allocation2 + $0x28] sm:$0xff]  ;;  %v79_v23 = vld [vmem:[#allocation5 + $0x20] sm:$0xff] }
  0x24   :  { %305 = vmatprep.subr.mxu0 %v448_v0  ;;  %340 = vmatprep.subr.mxu1 %v448_v0  ;;  %v63_v24 = vld [vmem:[#allocation2 + $0x20] sm:$0xff]  ;;  %v78_v25 = vld [vmem:[#allocation5 + $0x18] sm:$0xff]  ;;  %v77_v27 = vld [vmem:[#allocation5 + $0x10] sm:$0xff]  ;;  %p426_p0 = pnand %p425_p13, %p419_p10 }
  0x25   :  { %v62_v26 = vld [vmem:[#allocation2 + $0x18] sm:$0xff]  ;;  %v61_v28 = vld [vmem:[#allocation2 + $0x10] sm:$0xff]  ;;  %v76_v29 = vld [vmem:[#allocation5 + $0x8] sm:$0xff] }
  0x26   :  { %v60_v30 = vld [vmem:[#allocation2 + $0x8] sm:$0xff]  ;;  %v50_v31 = vld [vmem:[%s536_s0] sm:$0xff] }
  0x27   :  { %306 = vmatpush3.xpose.msra.mxu0 %v88_v5  ;;  %341 = vmatpush3.xpose.msra.mxu1 %v72_v6  ;;  %v264_v32 = vld [vmem:[%s537_s1] ss:$0 sm:$0xff]  ;;  %v265_v36 = vld [vmem:[%s540_s4 + $0x1] ss:$0 sm:$0xff] }
  0x28   :  { %307 = vmatprep.subr.mxu0 %v448_v0  ;;  %342 = vmatprep.subr.mxu1 %v448_v0  ;;  %v75_v33 = vld [vmem:[#allocation5] sm:$0xff]  ;;  %v58_v35 = vmul.f32 %v264_v32, %v50_v31 }
  0x29   :  { %v59_v34 = vld [vmem:[#allocation2] sm:$0xff] }
  0x2a   :  { %v266_v40 = vld [vmem:[%s540_s4] ss:$0 sm:$0xff] }
  0x2b   :  { %308 = vmatpush3.xpose.msra.mxu0 %v87_v7  ;;  %343 = vmatpush3.xpose.msra.mxu1 %v71_v8 }
  0x2c   :  { %309 = vmatprep.subr.mxu0 %v448_v0  ;;  %344 = vmatprep.subr.mxu1 %v448_v0 }
  0x2f   :  { %310 = vmatpush3.xpose.msra.mxu0 %v86_v9  ;;  %345 = vmatpush3.xpose.msra.mxu1 %v70_v10 }
  0x30   :  { %311 = vmatprep.subr.mxu0 %v448_v0  ;;  %346 = vmatprep.subr.mxu1 %v448_v0 }
  0x33   :  { %312 = vmatpush3.xpose.msra.mxu0 %v85_v11  ;;  %347 = vmatpush3.xpose.msra.mxu1 %v69_v12 }
  0x34   :  { %313 = vmatprep.subr.mxu0 %v448_v0  ;;  %348 = vmatprep.subr.mxu1 %v448_v0 }
  0x37   :  { %314 = vmatpush3.xpose.msra.mxu0 %v84_v13  ;;  %349 = vmatpush3.xpose.msra.mxu1 %v68_v14 }
  0x38   :  { %315 = vmatprep.subr.mxu0 %v448_v0  ;;  %350 = vmatprep.subr.mxu1 %v448_v0 }
  0x3b   :  { %316 = vmatpush3.xpose.msra.mxu0 %v83_v15  ;;  %351 = vmatpush3.xpose.msra.mxu1 %v67_v16 }
  0x3c   :  { %317 = vmatprep.subr.mxu0 %v448_v0  ;;  %352 = vmatprep.subr.mxu1 %v448_v0 }
  0x3f   :  { %318 = vmatpush3.xpose.msra.mxu0 %v82_v17  ;;  %353 = vmatpush3.xpose.msra.mxu1 %v66_v18 }
  0x40   :  { %319 = vmatprep.subr.mxu0 %v448_v0  ;;  %354 = vmatprep.subr.mxu1 %v448_v0 }
  0x43   :  { %320 = vmatpush3.xpose.msra.mxu0 %v81_v19  ;;  %355 = vmatpush3.xpose.msra.mxu1 %v65_v20 }
  0x44   :  { %321 = vmatprep.subr.mxu0 %v448_v0  ;;  %356 = vmatprep.subr.mxu1 %v448_v0 }
  0x47   :  { %322 = vmatpush3.xpose.msra.mxu0 %v80_v21  ;;  %357 = vmatpush3.xpose.msra.mxu1 %v64_v22 }
  0x48   :  { %323 = vmatprep.subr.mxu0 %v448_v0  ;;  %358 = vmatprep.subr.mxu1 %v448_v0 }
  0x4b   :  { %324 = vmatpush3.xpose.msra.mxu0 %v79_v23  ;;  %359 = vmatpush3.xpose.msra.mxu1 %v63_v24 }
  0x4c   :  { %325 = vmatprep.subr.mxu0 %v448_v0  ;;  %360 = vmatprep.subr.mxu1 %v448_v0 }
  0x4f   :  { %326 = vmatpush3.xpose.msra.mxu0 %v78_v25  ;;  %361 = vmatpush3.xpose.msra.mxu1 %v62_v26 }
  0x50   :  { %327 = vmatprep.subr.mxu0 %v448_v0  ;;  %362 = vmatprep.subr.mxu1 %v448_v0 }
  0x53   :  { %328 = vmatpush3.xpose.msra.mxu0 %v77_v27  ;;  %363 = vmatpush3.xpose.msra.mxu1 %v61_v28 }
  0x54   :  { %329 = vmatprep.subr.mxu0 %v448_v0  ;;  %364 = vmatprep.subr.mxu1 %v448_v0 }
  0x57   :  { %330 = vmatpush3.xpose.msra.mxu0 %v76_v29  ;;  %365 = vmatpush3.xpose.msra.mxu1 %v60_v30 }
  0x58   :  { %331 = vmatprep.subr.mxu0 %v448_v0  ;;  %366 = vmatprep.subr.mxu1 %v448_v0 }
  0x5b   :  { %332 = vmatpush3.xpose.msra.mxu0 %v75_v33  ;;  %367 = vmatpush3.xpose.msra.mxu1 %v59_v34 }
  0x5e   :  { %334 = vmatmul.mubr.f32.vlgmr.msra.gmra.mxu0 %v58_v35  ;;  %369 = vmatmul.mubr.f32.vlgmr.msra.gmra.mxu1 %v50_v31 }
 0x11e   :  { %v157_v37 = vpop.f32.mrf.mxu0  ;;  %v237_v38 = vpop.f32.mrf.mxu1 }
 0x11f   :  { %v170_v39 = vmul.f32 %v265_v36, %v157_v37 }
 0x120   :  { %v335_v41 = vpop.f32.mrf.mxu0  ;;  %v370_v42 = vpop.f32.mrf.mxu1 }
 0x121   :  { %v238_v43 = vadd.f32 %v237_v38, %v170_v39 }
 0x123   :  { %v245_v44 = vadd.f32 %v266_v40, %v238_v43 }
 0x125   :  { %246 = vst [vmem:[#allocation7] sm:$0xff] %v245_v44 }
 0x126   :  { %429 = shalt.err (!%p426_p0)
}
 0x127   :  { %256 = dma.vmem_to_hbm [thread:$0]  %s254_s10, 128, %s541_s5, [#allocation4]  }
 0x128   :  { %442 = dma.done.wait [#allocation4], 128  }
 0x129   :  { %443 = vsyncadd [#allocation4], 4294967168 }
 0x12a   :  { %260 = vsyncpa [#allocation3], 1 }
 0x12b   :  { %261 = vsyncpa [#allocation6], 1 }
 0x12c   :  { %262 = vsyncpa [#allocation4], 1 }

</bundles_post_ra>
